<compile_context>
chip_gen: v5e
topology: v5e:2x2
jax: 0.10.0
libtpu: 0.0.40
codegen_flags: <defaults>
</compile_context>

<pallas_src>
import math
import functools

import jax
import jax.numpy as jnp
from jax import lax
from jax.experimental import pallas as pl
from jax.experimental.pallas import tpu as pltpu


# ----------------------------------------------------------------------------
# Kernels
# ----------------------------------------------------------------------------
def _recursive_linear_kernel(x_ref, w_ref, lx_ref, b_ref, o_ref, acc_ref):
    """One (i, j, k) grid step of  y = x @ W^T + lx @ B^T.

    x_ref:   (tm, tk)     rows of x                      block (i, k)
    w_ref:   (tn, tk)     rows of W, native (out, in)    block (j, k)
    lx_ref:  (tm, r_pad)  precomputed x @ A^T            block (i, 0)  k-invariant
    b_ref:   (tn, r_pad)  rows of B, native (out, rank)  block (j, 0)  k-invariant
    acc_ref: (tm, tn)     f32 accumulator, persists across the k axis
    """
    k = pl.program_id(2)

    @pl.when(k == 0)
    def _():
        # Seed the accumulator with the (k-independent) LoRA term lx @ B^T.
        acc_ref[...] = lax.dot_general(
            lx_ref[...], b_ref[...],
            dimension_numbers=(((1,), (1,)), ((), ())),
            preferred_element_type=jnp.float32)

    # Base term: x @ W^T (contract the last axis of both native-layout tiles).
    acc_ref[...] += lax.dot_general(
        x_ref[...], w_ref[...],
        dimension_numbers=(((1,), (1,)), ((), ())),
        preferred_element_type=jnp.float32)

    @pl.when(k == pl.num_programs(2) - 1)
    def _():
        o_ref[...] = acc_ref[...].astype(o_ref.dtype)


def _linear_kernel(x_ref, w_ref, o_ref, acc_ref):
    """Plain y = x @ W^T (no-LoRA / rank == 0 path)."""
    k = pl.program_id(2)

    @pl.when(k == 0)
    def _():
        acc_ref[...] = jnp.zeros_like(acc_ref)

    acc_ref[...] += lax.dot_general(
        x_ref[...], w_ref[...],
        dimension_numbers=(((1,), (1,)), ((), ())),
        preferred_element_type=jnp.float32)

    @pl.when(k == pl.num_programs(2) - 1)
    def _():
        o_ref[...] = acc_ref[...].astype(o_ref.dtype)


# ----------------------------------------------------------------------------
# Wrapper helpers
# ----------------------------------------------------------------------------
def _round_up(x, m):
    return ((x + m - 1) // m) * m


def _pad_to(arr, shape):
    pads = [(0, s - d) for d, s in zip(arr.shape, shape)]
    if any(p[1] for p in pads):
        return jnp.pad(arr, pads)
    return arr


def _pick_tile(dim, pref, align=128):
    """Largest multiple of `align` <= pref that divides round_up(dim, align).

    Choosing a divisor of the 128-aligned dim avoids padding the weight in HBM
    for typical (128-aligned) model shapes.
    """
    padded = _round_up(dim, align)
    best = align
    t = align
    limit = min(pref, padded)
    while t <= limit:
        if padded % t == 0:
            best = t
        t += align
    return best


def _sublane(dtype):
    if dtype == jnp.float32:
        return 8
    if dtype in (jnp.bfloat16, jnp.float16):
        return 16
    return 32


def _vmem_capacity_bytes():
    # Generation-aware capacity (v5e/v6e: 128 MiB; v7x: 64 MiB per TensorCore).
    try:
        cap = getattr(pltpu.get_tpu_info(), "vmem_capacity_bytes", None)
        if cap:
            return int(cap)
    except Exception:
        pass
    return 64 << 20   # conservative fallback (v7x per-core VMEM)


def merge_lora_weights(weight, lora_A, lora_B):
    """W_eff = W + B @ A: fold LoRA into the base weight once (inference reuse)."""
    w32 = weight.astype(jnp.float32) + (
        lora_B.astype(jnp.float32) @ lora_A.astype(jnp.float32))
    return w32.astype(weight.dtype)


# ----------------------------------------------------------------------------
# Wrapper
# ----------------------------------------------------------------------------
@functools.partial(jax.jit, static_argnames=("tm", "tn", "tk"))
def recursive_linear(x, weight, lora_A=None, lora_B=None, *,
                     tm=512, tn=512, tk=1024):
    """y = x @ W^T + (x @ A^T) @ B^T.

    x: (..., in_features); weight: (out, in); lora_A: (r, in); lora_B: (out, r).
    lora_A / lora_B may be None (or rank 0) -> plain linear.
    """
    orig_shape = x.shape
    in_features = orig_shape[-1]
    out_features = weight.shape[0]
    dtype = x.dtype
    itemsize = jnp.dtype(dtype).itemsize

    has_lora = (lora_A is not None and lora_B is not None
                and lora_A.shape[0] > 0)
    # TODO(synk): PyTorch's rank==0 LoRA returns zeros_like(x) (in_features wide),
    # which only type-checks when in_features == out_features; we implement the
    # intended semantics (base linear only).

    x2d = x.reshape(-1, in_features)
    M = x2d.shape[0]

    # --- tile selection -------------------------------------------------------
    sub = _sublane(dtype)
    tm_eff = _round_up(min(tm, _round_up(M, sub)), sub)
    tn_eff = _pick_tile(out_features, tn)
    tk_eff = _pick_tile(in_features, tk)

    Mp = _round_up(M, tm_eff)
    Np = _round_up(out_features, tn_eff)
    Kp = _round_up(in_features, tk_eff)

    grid = (Mp // tm_eff, Np // tn_eff, Kp // tk_eff)

    # Weight stays in its native (out, in) layout; padded only when the problem
    # dims are not already 128-aligned (no transpose, no pad in the common case).
    weight = weight.astype(dtype)
    wp = _pad_to(weight, (Np, Kp))
    xp = _pad_to(x2d, (Mp, Kp))

    # --- VMEM budget (generation aware) ---------------------------------------
    need = 2 * (tm_eff * tk_eff + tn_eff * tk_eff) * itemsize   # x, W (dbl buf)
    need += 2 * tm_eff * tn_eff * itemsize                      # output
    need += tm_eff * tn_eff * 4                                 # f32 accumulator

    if has_lora:
        rank = lora_A.shape[0]
        r_pad = _round_up(rank, 128)                            # lane-dense rank
        # lx = x @ A^T, hoisted out of the main kernel (tiny matmul). Keeping it
        # in the input dtype matches the PyTorch intermediate precision.
        lx = jnp.einsum("mk,rk->mr", x2d, lora_A.astype(dtype)).astype(dtype)
        lxp = _pad_to(lx, (Mp, r_pad))
        bp = _pad_to(lora_B.astype(dtype), (Np, r_pad))
        need += 2 * (tm_eff * r_pad + tn_eff * r_pad) * itemsize

    vmem_limit = int(min(need + (16 << 20), (_vmem_capacity_bytes() * 3) // 4))

    compiler_params = pltpu.CompilerParams(
        # lx is hoisted, so every (i, j) output tile is independent: both M and
        # N grid axes are core-parallel (megacore / v7x 2 TCs); K is the
        # innermost reduction axis.
        dimension_semantics=("parallel", "parallel", "arbitrary"),
        vmem_limit_bytes=vmem_limit,
    )

    if has_lora:
        out = pl.pallas_call(
            _recursive_linear_kernel,
            out_shape=jax.ShapeDtypeStruct((Mp, Np), dtype),
            grid_spec=pltpu.PrefetchScalarGridSpec(
                num_scalar_prefetch=0,
                grid=grid,
                in_specs=[
                    pl.BlockSpec((tm_eff, tk_eff), lambda i, j, k: (i, k)),
                    pl.BlockSpec((tn_eff, tk_eff), lambda i, j, k: (j, k)),
                    pl.BlockSpec((tm_eff, r_pad), lambda i, j, k: (i, 0)),
                    pl.BlockSpec((tn_eff, r_pad), lambda i, j, k: (j, 0)),
                ],
                out_specs=pl.BlockSpec((tm_eff, tn_eff),
                                       lambda i, j, k: (i, j)),
                scratch_shapes=[pltpu.VMEM((tm_eff, tn_eff), jnp.float32)],
            ),
            compiler_params=compiler_params,
        )(xp, wp, lxp, bp)
    else:
        out = pl.pallas_call(
            _linear_kernel,
            out_shape=jax.ShapeDtypeStruct((Mp, Np), dtype),
            grid_spec=pltpu.PrefetchScalarGridSpec(
                num_scalar_prefetch=0,
                grid=grid,
                in_specs=[
                    pl.BlockSpec((tm_eff, tk_eff), lambda i, j, k: (i, k)),
                    pl.BlockSpec((tn_eff, tk_eff), lambda i, j, k: (j, k)),
                ],
                out_specs=pl.BlockSpec((tm_eff, tn_eff),
                                       lambda i, j, k: (i, j)),
                scratch_shapes=[pltpu.VMEM((tm_eff, tn_eff), jnp.float32)],
            ),
            compiler_params=compiler_params,
        )(xp, wp)

    out = out[:M, :out_features]
    return out.reshape(*orig_shape[:-1], out_features)


# ----------------------------------------------------------------------------
# Self-test
# ----------------------------------------------------------------------------
if __name__ == "__main__":
    # Small shapes consistent with the module: batch=2, seq=8, hidden=32.
    batch, seq = 2, 8
    in_features, out_features, rank = 32, 32, 4

    key = jax.random.PRNGKey(0)
    kx, kw, ka, kb = jax.random.split(key, 4)

    x = jax.random.normal(kx, (batch, seq, in_features), dtype=jnp.float32)
    # Parameter init mirroring the module's __init__:
    weight = 0.02 * jax.random.normal(
        kw, (out_features, in_features), dtype=jnp.float32)
    lora_B = jax.random.normal(
        kb, (out_features, rank), dtype=jnp.float32) / math.sqrt(rank)
    lora_A = jax.random.normal(
        ka, (rank, in_features), dtype=jnp.float32) / math.sqrt(rank)

    # 1) Fused LoRA path.
    y = jax.block_until_ready(recursive_linear(x, weight, lora_A, lora_B))
    y_ref = x @ weight.T + (x @ lora_A.T) @ lora_B.T
    assert y.shape == (batch, seq, out_features)
    assert jnp.allclose(y, y_ref, atol=1e-5, rtol=1e-5), "LoRA path mismatch"

    # 2) rank == 0 / no-LoRA path (plain linear kernel).
    y0 = jax.block_until_ready(recursive_linear(x, weight))
    assert jnp.allclose(y0, x @ weight.T, atol=1e-5, rtol=1e-5), "linear mismatch"

    # 3) Multi-tile grid exercised with explicit small tiles (checks the
    #    (i, j, k) accumulation and the k-invariant LoRA blocks).
    in2, out2, rank2 = 256, 256, 4
    k2x, k2w, k2a, k2b = jax.random.split(jax.random.PRNGKey(1), 4)
    x2 = jax.random.normal(k2x, (batch, seq, in2), dtype=jnp.float32)
    w2 = 0.02 * jax.random.normal(k2w, (out2, in2), dtype=jnp.float32)
    b2 = jax.random.normal(k2b, (out2, rank2), jnp.float32) / math.sqrt(rank2)
    a2 = jax.random.normal(k2a, (rank2, in2), jnp.float32) / math.sqrt(rank2)
    y2 = jax.block_until_ready(
        recursive_linear(x2, w2, a2, b2, tm=8, tn=128, tk=128))
    y2_ref = x2 @ w2.T + (x2 @ a2.T) @ b2.T
    assert jnp.allclose(y2, y2_ref, atol=1e-4, rtol=1e-4), "tiled path mismatch"

    # 4) Merged-weight inference path (W_eff = W + B @ A) matches the fused path.
    w_eff = merge_lora_weights(w2, a2, b2)
    y3 = jax.block_until_ready(recursive_linear(x2, w_eff, tm=8, tn=128, tk=128))
    assert jnp.allclose(y3, y2_ref, atol=1e-3, rtol=1e-3), "merged path mismatch"

    print("KERNEL_OK")
</pallas_src>

<mosaic_0001>
module attributes {stable_mosaic.version = 11 : i64} {
  func.func @_recursive_linear_kernel(%arg0: i32, %arg1: i32, %arg2: i32, %arg3: memref<16x128xf32, #tpu.memory_space<vmem>>, %arg4: memref<128x128xf32, #tpu.memory_space<vmem>>, %arg5: memref<16x128xf32, #tpu.memory_space<vmem>>, %arg6: memref<128x128xf32, #tpu.memory_space<vmem>>, %arg7: memref<16x128xf32, #tpu.memory_space<vmem>>, %arg8: memref<16x128xf32, #tpu.memory_space<vmem>>) attributes {dimension_semantics = [#tpu.dimension_semantics<parallel>, #tpu.dimension_semantics<parallel>, #tpu.dimension_semantics<arbitrary>], iteration_bounds = array<i64: 1, 1, 1>, scalar_prefetch = 0 : i64, scratch_operands = 1 : i64, tpu.core_type = #tpu.core_type<tc>, window_params = [{transform_indices = @transform_0, window_bounds = array<i64: 16, 128>}, {transform_indices = @transform_1, window_bounds = array<i64: 128, 128>}, {transform_indices = @transform_2, window_bounds = array<i64: 16, 128>}, {transform_indices = @transform_3, window_bounds = array<i64: 128, 128>}, {transform_indices = @transform_4, window_bounds = array<i64: 16, 128>}]} {
    %c0_i32 = arith.constant 0 : i32
    %0 = arith.cmpi eq, %arg2, %c0_i32 : i32
    %1 = arith.extui %0 : i1 to i32
    %c0_i32_0 = arith.constant 0 : i32
    %2 = arith.cmpi ne, %1, %c0_i32_0 : i32
    scf.if %2 {
      %c0_10 = arith.constant 0 : index
      %c0_11 = arith.constant 0 : index
      %12 = vector.load %arg5[%c0_10, %c0_11] : memref<16x128xf32, #tpu.memory_space<vmem>>, vector<16x128xf32>
      %c0_12 = arith.constant 0 : index
      %c0_13 = arith.constant 0 : index
      %13 = vector.load %arg6[%c0_12, %c0_13] : memref<128x128xf32, #tpu.memory_space<vmem>>, vector<128x128xf32>
      %cst_14 = arith.constant dense<0.000000e+00> : vector<16x128xf32>
      %14 = tpu.matmul %12, %13, %cst_14 {dimension_numbers = #tpu.dot_dimension_numbers<[1], [1], [0], [0], [0, 0, 1, 0], [], []>} : vector<16x128xf32>, vector<128x128xf32>, vector<16x128xf32> -> vector<16x128xf32>
      %c0_15 = arith.constant 0 : index
      %c0_16 = arith.constant 0 : index
      %15 = vector.load %arg8[%c0_15, %c0_16] : memref<16x128xf32, #tpu.memory_space<vmem>>, vector<16x128xf32>
      tpu.vector_store %arg8[%c0_15, %c0_16], %14 {strides = array<i32>} : memref<16x128xf32, #tpu.memory_space<vmem>>, vector<16x128xf32>,
    } else {
    }
    %c0 = arith.constant 0 : index
    %c0_1 = arith.constant 0 : index
    %3 = vector.load %arg8[%c0, %c0_1] : memref<16x128xf32, #tpu.memory_space<vmem>>, vector<16x128xf32>
    %c0_2 = arith.constant 0 : index
    %c0_3 = arith.constant 0 : index
    %4 = vector.load %arg3[%c0_2, %c0_3] : memref<16x128xf32, #tpu.memory_space<vmem>>, vector<16x128xf32>
    %c0_4 = arith.constant 0 : index
    %c0_5 = arith.constant 0 : index
    %5 = vector.load %arg4[%c0_4, %c0_5] : memref<128x128xf32, #tpu.memory_space<vmem>>, vector<128x128xf32>
    %cst = arith.constant dense<0.000000e+00> : vector<16x128xf32>
    %6 = tpu.matmul %4, %5, %cst {dimension_numbers = #tpu.dot_dimension_numbers<[1], [1], [0], [0], [0, 0, 1, 0], [], []>} : vector<16x128xf32>, vector<128x128xf32>, vector<16x128xf32> -> vector<16x128xf32>
    %7 = arith.addf %3, %6 : vector<16x128xf32>
    %c0_6 = arith.constant 0 : index
    %c0_7 = arith.constant 0 : index
    %8 = vector.load %arg8[%c0_6, %c0_7] : memref<16x128xf32, #tpu.memory_space<vmem>>, vector<16x128xf32>
    tpu.vector_store %arg8[%c0_6, %c0_7], %7 {strides = array<i32>} : memref<16x128xf32, #tpu.memory_space<vmem>>, vector<16x128xf32>,
    %c0_i32_8 = arith.constant 0 : i32
    %9 = arith.cmpi eq, %arg2, %c0_i32_8 : i32
    %10 = arith.extui %9 : i1 to i32
    %c0_i32_9 = arith.constant 0 : i32
    %11 = arith.cmpi ne, %10, %c0_i32_9 : i32
    scf.if %11 {
      %c0_10 = arith.constant 0 : index
      %c0_11 = arith.constant 0 : index
      %12 = vector.load %arg8[%c0_10, %c0_11] : memref<16x128xf32, #tpu.memory_space<vmem>>, vector<16x128xf32>
      %c0_12 = arith.constant 0 : index
      %c0_13 = arith.constant 0 : index
      %13 = vector.load %arg7[%c0_12, %c0_13] : memref<16x128xf32, #tpu.memory_space<vmem>>, vector<16x128xf32>
      tpu.vector_store %arg7[%c0_12, %c0_13], %12 {strides = array<i32>} : memref<16x128xf32, #tpu.memory_space<vmem>>, vector<16x128xf32>,
    } else {
    }
    return
  }
  func.func @transform_0(%arg0: i32, %arg1: i32, %arg2: i32) -> (i32, i32) {
    %c0_i32 = arith.constant 0 : i32
    return %arg0, %arg2 : i32, i32
  }
  func.func @transform_1(%arg0: i32, %arg1: i32, %arg2: i32) -> (i32, i32) {
    %c0_i32 = arith.constant 0 : i32
    return %arg1, %arg2 : i32, i32
  }
  func.func @transform_2(%arg0: i32, %arg1: i32, %arg2: i32) -> (i32, i32) {
    %c0_i32 = arith.constant 0 : i32
    %c0_i32_0 = arith.constant 0 : i32
    return %arg0, %c0_i32 : i32, i32
  }
  func.func @transform_3(%arg0: i32, %arg1: i32, %arg2: i32) -> (i32, i32) {
    %c0_i32 = arith.constant 0 : i32
    %c0_i32_0 = arith.constant 0 : i32
    return %arg1, %c0_i32 : i32, i32
  }
  func.func @transform_4(%arg0: i32, %arg1: i32, %arg2: i32) -> (i32, i32) {
    %c0_i32 = arith.constant 0 : i32
    return %arg0, %arg1 : i32, i32
  }
}

</mosaic_0001>

<bundles_post_ra>
// kernel: recursive_linear.1
= control target key start
LH: loop header
LB: loop body
LE: loop exit
PB: predicated region body
PF: predicated region fallthrough
CT: control target
= control target key end

     0   :  { %s293_s3 = inlined_call_operand.vmem [shape: f32[128,128], index: 3, kind: input, shape index: {}]   ;;  %s294_s1 = inlined_call_operand.vmem [shape: f32[128,128], index: 1, kind: input, shape index: {}]   ;;  %s295_s2 = inlined_call_operand.vmem [shape: f32[16,128], index: 2, kind: input, shape index: {}]   ;;  %s296_s0 = inlined_call_operand.vmem [shape: f32[16,128], index: 0, kind: input, shape index: {}]   ;;  %s297_s4 = inlined_call_operand.vmem [shape: f32[16,128], index: 4, kind: output, shape index: {}]  }
   0x1   :  { %v38_v0 = vld [vmem:[%s293_s3 + $0x78] sm:$0xff]  ;;  %v37_v2 = vld [vmem:[%s293_s3 + $0x70] sm:$0xff]  ;;  %v36_v4 = vld [vmem:[%s293_s3 + $0x68] sm:$0xff] }
   0x2   :  { %v83_v1 = vld [vmem:[%s294_s1 + $0x78] sm:$0xff]  ;;  %122 = vmatpush.xpose.msra.mxu2 %v38_v0  ;;  %v82_v3 = vld [vmem:[%s294_s1 + $0x70] sm:$0xff]  ;;  %39 = vmatpush.xpose.msra.mxu0 %v38_v0  ;;  %v81_v5 = vld [vmem:[%s294_s1 + $0x68] sm:$0xff] }
   0x3   :  { %138 = vmatpush.xpose.msra.mxu3 %v83_v1  ;;  %84 = vmatpush.xpose.msra.mxu1 %v83_v1  ;;  %v35_v6 = vld [vmem:[%s293_s3 + $0x60] sm:$0xff]  ;;  %v34_v8 = vld [vmem:[%s293_s3 + $0x58] sm:$0xff]  ;;  %v33_v10 = vld [vmem:[%s293_s3 + $0x50] sm:$0xff] }
   0x4   :  { %v80_v7 = vld [vmem:[%s294_s1 + $0x60] sm:$0xff]  ;;  %v79_v9 = vld [vmem:[%s294_s1 + $0x58] sm:$0xff]  ;;  %v78_v11 = vld [vmem:[%s294_s1 + $0x50] sm:$0xff] }
   0x5   :  { %v32_v12 = vld [vmem:[%s293_s3 + $0x48] sm:$0xff]  ;;  %v31_v14 = vld [vmem:[%s293_s3 + $0x40] sm:$0xff]  ;;  %v30_v16 = vld [vmem:[%s293_s3 + $0x38] sm:$0xff] }
   0x6   :  { %123 = vmatpush.xpose.msra.mxu2 %v37_v2  ;;  %40 = vmatpush.xpose.msra.mxu0 %v37_v2  ;;  %v77_v13 = vld [vmem:[%s294_s1 + $0x48] sm:$0xff]  ;;  %v76_v15 = vld [vmem:[%s294_s1 + $0x40] sm:$0xff]  ;;  %v75_v17 = vld [vmem:[%s294_s1 + $0x38] sm:$0xff] }
   0x7   :  { %139 = vmatpush.xpose.msra.mxu3 %v82_v3  ;;  %85 = vmatpush.xpose.msra.mxu1 %v82_v3  ;;  %v29_v18 = vld [vmem:[%s293_s3 + $0x30] sm:$0xff]  ;;  %v28_v20 = vld [vmem:[%s293_s3 + $0x28] sm:$0xff]  ;;  %v27_v22 = vld [vmem:[%s293_s3 + $0x20] sm:$0xff] }
   0x8   :  { %v74_v19 = vld [vmem:[%s294_s1 + $0x30] sm:$0xff]  ;;  %v73_v21 = vld [vmem:[%s294_s1 + $0x28] sm:$0xff]  ;;  %v72_v23 = vld [vmem:[%s294_s1 + $0x20] sm:$0xff] }
   0x9   :  { %v26_v24 = vld [vmem:[%s293_s3 + $0x18] sm:$0xff]  ;;  %v25_v26 = vld [vmem:[%s293_s3 + $0x10] sm:$0xff]  ;;  %v24_v28 = vld [vmem:[%s293_s3 + $0x8] sm:$0xff] }
   0xa   :  { %124 = vmatpush.xpose.msra.mxu2 %v36_v4  ;;  %41 = vmatpush.xpose.msra.mxu0 %v36_v4  ;;  %v71_v25 = vld [vmem:[%s294_s1 + $0x18] sm:$0xff]  ;;  %v70_v27 = vld [vmem:[%s294_s1 + $0x10] sm:$0xff]  ;;  %v69_v29 = vld [vmem:[%s294_s1 + $0x8] sm:$0xff] }
   0xb   :  { %140 = vmatpush.xpose.msra.mxu3 %v81_v5  ;;  %86 = vmatpush.xpose.msra.mxu1 %v81_v5  ;;  %v23_v30 = vld [vmem:[%s293_s3] sm:$0xff]  ;;  %v22_v32 = vld [vmem:[%s295_s2 + $0x8] sm:$0xff] }
   0xc   :  { %v68_v31 = vld [vmem:[%s294_s1] sm:$0xff]  ;;  %v67_v33 = vld [vmem:[%s296_s0 + $0x8] sm:$0xff] }
   0xd   :  { %v21_v34 = vld [vmem:[%s295_s2] sm:$0xff] }
   0xe   :  { %125 = vmatpush.xpose.msra.mxu2 %v35_v6  ;;  %42 = vmatpush.xpose.msra.mxu0 %v35_v6  ;;  %v66_v35 = vld [vmem:[%s296_s0] sm:$0xff] }
   0xf   :  { %141 = vmatpush.xpose.msra.mxu3 %v80_v7  ;;  %87 = vmatpush.xpose.msra.mxu1 %v80_v7 }
  0x12   :  { %126 = vmatpush.xpose.msra.mxu2 %v34_v8  ;;  %43 = vmatpush.xpose.msra.mxu0 %v34_v8 }
  0x13   :  { %142 = vmatpush.xpose.msra.mxu3 %v79_v9  ;;  %88 = vmatpush.xpose.msra.mxu1 %v79_v9 }
  0x16   :  { %127 = vmatpush.xpose.msra.mxu2 %v33_v10  ;;  %44 = vmatpush.xpose.msra.mxu0 %v33_v10 }
  0x17   :  { %143 = vmatpush.xpose.msra.mxu3 %v78_v11  ;;  %89 = vmatpush.xpose.msra.mxu1 %v78_v11 }
  0x1a   :  { %128 = vmatpush.xpose.msra.mxu2 %v32_v12  ;;  %45 = vmatpush.xpose.msra.mxu0 %v32_v12 }
  0x1b   :  { %144 = vmatpush.xpose.msra.mxu3 %v77_v13  ;;  %90 = vmatpush.xpose.msra.mxu1 %v77_v13 }
  0x1e   :  { %129 = vmatpush.xpose.msra.mxu2 %v31_v14  ;;  %46 = vmatpush.xpose.msra.mxu0 %v31_v14 }
  0x1f   :  { %145 = vmatpush.xpose.msra.mxu3 %v76_v15  ;;  %91 = vmatpush.xpose.msra.mxu1 %v76_v15 }
  0x22   :  { %130 = vmatpush.xpose.msra.mxu2 %v30_v16  ;;  %47 = vmatpush.xpose.msra.mxu0 %v30_v16 }
  0x23   :  { %146 = vmatpush.xpose.msra.mxu3 %v75_v17  ;;  %92 = vmatpush.xpose.msra.mxu1 %v75_v17 }
  0x26   :  { %131 = vmatpush.xpose.msra.mxu2 %v29_v18  ;;  %48 = vmatpush.xpose.msra.mxu0 %v29_v18 }
  0x27   :  { %147 = vmatpush.xpose.msra.mxu3 %v74_v19  ;;  %93 = vmatpush.xpose.msra.mxu1 %v74_v19 }
  0x2a   :  { %132 = vmatpush.xpose.msra.mxu2 %v28_v20  ;;  %49 = vmatpush.xpose.msra.mxu0 %v28_v20 }
  0x2b   :  { %148 = vmatpush.xpose.msra.mxu3 %v73_v21  ;;  %94 = vmatpush.xpose.msra.mxu1 %v73_v21 }
  0x2e   :  { %133 = vmatpush.xpose.msra.mxu2 %v27_v22  ;;  %50 = vmatpush.xpose.msra.mxu0 %v27_v22 }
  0x2f   :  { %149 = vmatpush.xpose.msra.mxu3 %v72_v23  ;;  %95 = vmatpush.xpose.msra.mxu1 %v72_v23 }
  0x32   :  { %134 = vmatpush.xpose.msra.mxu2 %v26_v24  ;;  %51 = vmatpush.xpose.msra.mxu0 %v26_v24 }
  0x33   :  { %150 = vmatpush.xpose.msra.mxu3 %v71_v25  ;;  %96 = vmatpush.xpose.msra.mxu1 %v71_v25 }
  0x36   :  { %135 = vmatpush.xpose.msra.mxu2 %v25_v26  ;;  %52 = vmatpush.xpose.msra.mxu0 %v25_v26 }
  0x37   :  { %151 = vmatpush.xpose.msra.mxu3 %v70_v27  ;;  %97 = vmatpush.xpose.msra.mxu1 %v70_v27 }
  0x3a   :  { %136 = vmatpush.xpose.msra.mxu2 %v24_v28  ;;  %53 = vmatpush.xpose.msra.mxu0 %v24_v28 }
  0x3b   :  { %152 = vmatpush.xpose.msra.mxu3 %v69_v29  ;;  %98 = vmatpush.xpose.msra.mxu1 %v69_v29 }
  0x3e   :  { %137 = vmatpush.xpose.msra.mxu2 %v23_v30  ;;  %54 = vmatpush.xpose.msra.mxu0 %v23_v30 }
  0x3f   :  { %153 = vmatpush.xpose.msra.mxu3 %v68_v31  ;;  %99 = vmatpush.xpose.msra.mxu1 %v68_v31 }
  0x41   :  { %58 = vmatmul.f32.vlgmr.msra.gmra.mxu2 %v22_v32  ;;  %55 = vmatmul.f32.vlgmr.msra.gmra.mxu0 %v21_v34 }
  0x42   :  { %103 = vmatmul.f32.vlgmr.msra.gmra.mxu3 %v67_v33  ;;  %100 = vmatmul.f32.vlgmr.msra.gmra.mxu1 %v66_v35 }
  0xbe   :  { %v56_v36 = vpop.f32.mrf.mxu0 }
  0xbf   :  { %v101_v37 = vpop.f32.mrf.mxu1 }
  0xc0   :  { %v107_v38 = vadd.f32 %v101_v37, %v56_v36 }
  0xc2   :  { %116 = vst [vmem:[%s297_s4] sm:$0xff] %v107_v38 }
  0xc4   :  { %v59_v39 = vpop.f32.mrf.mxu2 }
  0xc5   :  { %v104_v40 = vpop.f32.mrf.mxu3 }
  0xc6   :  { %v108_v41 = vadd.f32 %v104_v40, %v59_v39 }
  0xc8   :  { %117 = vst [vmem:[%s297_s4 + $0x8] sm:$0xff] %v108_v41 }

</bundles_post_ra>
